<compile_context>
chip_gen: v5e
topology: v5e:2x2
jax: 0.10.0
libtpu: 0.0.40
codegen_flags: <defaults>
</compile_context>

<pallas_src>
import functools

import jax
import jax.numpy as jnp
from jax.experimental import pallas as pl
from jax.experimental.pallas import tpu as pltpu


def _ce_kernel(x_ref, y_ref, loss_ref, m_sc, l_sc, t_sc, *, n_classes: int,
               ragged_c: bool):
    # x_ref:    [BN, BC] logits tile
    # y_ref:    [BN, 1]  int32 targets for this row block
    # loss_ref: [BN, 1]  f32 per-example loss (written on the last class step)
    # m/l/t_sc: [BN, 1]  f32 online-softmax state (running max, running
    #                    sum-of-exp, running target logit)
    j = pl.program_id(1)
    n_j = pl.num_programs(1)

    @pl.when(j == 0)
    def _():
        m_sc[...] = jnp.full_like(m_sc, -jnp.inf)
        l_sc[...] = jnp.zeros_like(l_sc)
        t_sc[...] = jnp.zeros_like(t_sc)

    x = x_ref[...].astype(jnp.float32)            # [BN, BC]
    bn, bc = x.shape

    # Block-local lane iota (cheap viota); targets are shifted into block-local
    # coordinates instead of materializing global column indices per element.
    col = jax.lax.broadcasted_iota(jnp.int32, (1, bc), 1)
    y_loc = y_ref[...] - j * bc                   # [BN, 1] int32

    def softmax_update(xv):
        # Flash-style online softmax along the class axis (per-row state).
        m_prev = m_sc[...]
        m_new = jnp.maximum(m_prev, jnp.max(xv, axis=-1, keepdims=True))
        alpha = jnp.exp(m_prev - m_new)
        l_sc[...] = alpha * l_sc[...] + jnp.sum(jnp.exp(xv - m_new), axis=-1,
                                                keepdims=True)
        m_sc[...] = m_new

    if not ragged_c:
        # C is covered exactly by the class blocks: no padded lanes, no mask.
        softmax_update(x)
    else:
        # Only the last class block has padded lanes; keep all steady-state
        # blocks free of the compare/select mask (mask-before-exp ordering is
        # preserved inside the masked branch).
        @pl.when(j < n_j - 1)
        def _():
            softmax_update(x)

        @pl.when(j == n_j - 1)
        def _():
            valid = n_classes - j * bc
            softmax_update(jnp.where(col < valid, x, -jnp.inf))

    # Target-logit contribution from this class block (one-hot select along
    # lanes; no cross-lane dynamic gather on TPU).  Valid targets never point
    # at padded lanes, so the unmasked tile is safe here.
    t_sc[...] += jnp.sum(jnp.where(col == y_loc, x, 0.0), axis=-1, keepdims=True)

    @pl.when(j == n_j - 1)
    def _():
        lse = m_sc[...] + jnp.log(l_sc[...])
        loss_ref[...] = (lse - t_sc[...]).astype(loss_ref.dtype)


# Non-x VMEM bytes per tile row: 3x (BN,1) f32 scratch + double-buffered
# (BN,1) i32 target and (BN,1) f32 loss blocks, all padded to 128 lanes.
_PER_ROW_EXTRA_BYTES = 3 * 512 + 2 * 512 + 2 * 512


def _round_down(v, m):
    return (v // m) * m


def _round_up(v, m):
    return -(-v // m) * m


def _vmem_budgets():
    """(tile budget, scoped-vmem cap) chosen per TPU generation."""
    try:
        info = pltpu.get_tpu_info()
        phys = int(getattr(info, "vmem_capacity_bytes", 0) or 0)
    except Exception:
        phys = 0
    if phys >= (128 << 20):          # v5e / v6e: 128 MiB physical VMEM
        return 48 << 20, 72 << 20
    # v7x (64 MiB physical per TensorCore) or unknown: stay conservative.
    return 32 << 20, 48 << 20


def _auto_tiles(n, c, itemsize, sublane, budget):
    """Pick (block_n, block_c) so double-buffered tiles fill `budget`."""
    if 64 * (2 * c * itemsize + _PER_ROW_EXTRA_BYTES) <= budget:
        # Whole class axis per tile while still keeping >= 64 rows per tile.
        block_c = c
    else:
        # Class-tiled path: fix ~512 rows and spend the rest of the budget on
        # the lane (class) axis, in multiples of 128 lanes.
        lane_budget = (budget - 512 * _PER_ROW_EXTRA_BYTES) // (2 * 512)
        block_c = max(512, _round_down(lane_budget // itemsize, 128))
        block_c = min(block_c, _round_up(c, 128))
    rows = budget // (2 * block_c * itemsize + _PER_ROW_EXTRA_BYTES)
    rows = min(max(sublane, _round_down(rows, sublane)), 4096)
    if n > rows:
        block_n = rows
    elif n >= 128:
        # Guarantee >= 2 row blocks so the "parallel" row axis can shard
        # across both TensorCores on v7x.
        block_n = _round_up(_round_up(n, 2) // 2, sublane)
    else:
        block_n = n
    return block_n, block_c


def cross_entropy_loss(x: jax.Array, y: jax.Array, *, block_n: int | None = None,
                       block_c: int | None = None) -> jax.Array:
    """x: [N, C] float logits, y: [N] integer class indices -> scalar mean CE."""
    n, c = x.shape
    assert y.shape == (n,)
    y2d = y.astype(jnp.int32).reshape(n, 1)
    itemsize = jnp.dtype(x.dtype).itemsize
    sublane = 16 if itemsize == 2 else 8          # bf16 native tiling is (16, 128)

    budget, vmem_cap = _vmem_budgets()
    auto_n, auto_c = _auto_tiles(n, c, itemsize, sublane, budget)
    block_n = auto_n if block_n is None else block_n
    block_c = auto_c if block_c is None else block_c
    assert block_c == c or block_c % 128 == 0
    assert block_n == n or block_n % sublane == 0

    ragged_c = (block_c != c) and (c % block_c != 0)
    grid = (pl.cdiv(n, block_n), pl.cdiv(c, block_c))

    vmem_need = (2 * block_n * block_c * itemsize
                 + block_n * _PER_ROW_EXTRA_BYTES + (2 << 20))
    vmem_limit = int(min(max(vmem_need, 32 << 20), vmem_cap))

    cost = pl.CostEstimate(
        flops=6 * n * c,                  # max/sub/sum/compare/select/scale
        transcendentals=n * c + 2 * n,    # exp per element + rescale/log per row
        bytes_accessed=n * c * itemsize + 8 * n,
    )

    per_example = pl.pallas_call(
        functools.partial(_ce_kernel, n_classes=c, ragged_c=ragged_c),
        out_shape=jax.ShapeDtypeStruct((n, 1), jnp.float32),
        grid_spec=pltpu.PrefetchScalarGridSpec(
            num_scalar_prefetch=0,
            grid=grid,
            in_specs=[
                pl.BlockSpec((block_n, block_c), lambda i, j: (i, j)),
                pl.BlockSpec((block_n, 1), lambda i, j: (i, 0)),
            ],
            out_specs=pl.BlockSpec((block_n, 1), lambda i, j: (i, 0)),
            scratch_shapes=[
                pltpu.VMEM((block_n, 1), jnp.float32),   # running max
                pltpu.VMEM((block_n, 1), jnp.float32),   # running sum of exp
                pltpu.VMEM((block_n, 1), jnp.float32),   # running target logit
            ],
        ),
        compiler_params=pltpu.CompilerParams(
            dimension_semantics=("parallel", "arbitrary"),
            vmem_limit_bytes=vmem_limit,
        ),
        cost_estimate=cost,
    )(x, y2d)

    # Tiny final reduction (mean over the global N) stays in plain XLA so the
    # row grid axis can remain "parallel".
    return jnp.sum(per_example) / jnp.float32(n)


def _ref_ce(x, y):
    xf = x.astype(jnp.float32)
    lse = jax.scipy.special.logsumexp(xf, axis=-1)
    return jnp.mean(lse - xf[jnp.arange(x.shape[0]), y])


if __name__ == "__main__":
    key = jax.random.PRNGKey(0)

    # Case 1: toy shape consistent with the module's usage (batch=8, classes=32).
    k1, k2, key = jax.random.split(key, 3)
    n1, c1 = 8, 32
    x1 = jax.random.normal(k1, (n1, c1), dtype=jnp.float32)
    y1 = jax.random.randint(k2, (n1,), 0, c1, dtype=jnp.int32)
    loss1 = cross_entropy_loss(x1, y1)
    jax.block_until_ready(loss1)
    assert jnp.allclose(loss1, _ref_ce(x1, y1), atol=1e-5, rtol=1e-5), (loss1, _ref_ce(x1, y1))

    # Case 2: ragged batch + ragged (tiled) class axis -> exercises the
    # mask-only-on-last-class-block path and partial row writeback.
    k3, k4, key = jax.random.split(key, 3)
    n2, c2 = 20, 200
    x2 = jax.random.normal(k3, (n2, c2), dtype=jnp.float32)
    y2 = jax.random.randint(k4, (n2,), 0, c2, dtype=jnp.int32)
    loss2 = cross_entropy_loss(x2, y2, block_n=8, block_c=128)
    jax.block_until_ready(loss2)
    assert jnp.allclose(loss2, _ref_ce(x2, y2), atol=1e-5, rtol=1e-5), (loss2, _ref_ce(x2, y2))

    # Case 3: auto-tiling path with >= 2 row blocks (megacore split) and a
    # whole-C class block (no masking at all).
    k5, k6, key = jax.random.split(key, 3)
    n3, c3 = 300, 384
    x3 = jax.random.normal(k5, (n3, c3), dtype=jnp.float32)
    y3 = jax.random.randint(k6, (n3,), 0, c3, dtype=jnp.int32)
    loss3 = cross_entropy_loss(x3, y3)
    jax.block_until_ready(loss3)
    assert jnp.allclose(loss3, _ref_ce(x3, y3), atol=1e-5, rtol=1e-5), (loss3, _ref_ce(x3, y3))

    print("KERNEL_OK")
</pallas_src>

<mosaic_0001>
module attributes {stable_mosaic.version = 11 : i64} {
  func.func @_ce_kernel(%arg0: i32, %arg1: i32, %arg2: memref<8x32xf32, #tpu.memory_space<vmem>>, %arg3: memref<8x1xi32, #tpu.memory_space<vmem>>, %arg4: memref<8x1xf32, #tpu.memory_space<vmem>>, %arg5: memref<8x1xf32, #tpu.memory_space<vmem>>, %arg6: memref<8x1xf32, #tpu.memory_space<vmem>>, %arg7: memref<8x1xf32, #tpu.memory_space<vmem>>) attributes {dimension_semantics = [#tpu.dimension_semantics<parallel>, #tpu.dimension_semantics<arbitrary>], iteration_bounds = array<i64: 1, 1>, scalar_prefetch = 0 : i64, scratch_operands = 3 : i64, tpu.core_type = #tpu.core_type<tc>, window_params = [{transform_indices = @transform_0, window_bounds = array<i64: 8, 32>}, {transform_indices = @transform_1, window_bounds = array<i64: 8, 1>}, {transform_indices = @transform_2, window_bounds = array<i64: 8, 1>}]} {
    %c0_i32 = arith.constant 0 : i32
    %0 = arith.cmpi eq, %arg1, %c0_i32 : i32
    %1 = arith.extui %0 : i1 to i32
    %c0_i32_0 = arith.constant 0 : i32
    %2 = arith.cmpi ne, %1, %c0_i32_0 : i32
    scf.if %2 {
      %cst_21 = arith.constant 0xFF800000 : f32
      %38 = vector.broadcast %cst_21 : f32 to vector<8x1xf32>
      %c0_22 = arith.constant 0 : index
      %c0_23 = arith.constant 0 : index
      %39 = vector.load %arg5[%c0_22, %c0_23] : memref<8x1xf32, #tpu.memory_space<vmem>>, vector<8x1xf32>
      tpu.vector_store %arg5[%c0_22, %c0_23], %38 {strides = array<i32>} : memref<8x1xf32, #tpu.memory_space<vmem>>, vector<8x1xf32>,
      %cst_24 = arith.constant 0.000000e+00 : f32
      %40 = vector.broadcast %cst_24 : f32 to vector<8x1xf32>
      %c0_25 = arith.constant 0 : index
      %c0_26 = arith.constant 0 : index
      %41 = vector.load %arg6[%c0_25, %c0_26] : memref<8x1xf32, #tpu.memory_space<vmem>>, vector<8x1xf32>
      tpu.vector_store %arg6[%c0_25, %c0_26], %40 {strides = array<i32>} : memref<8x1xf32, #tpu.memory_space<vmem>>, vector<8x1xf32>,
      %cst_27 = arith.constant 0.000000e+00 : f32
      %42 = vector.broadcast %cst_27 : f32 to vector<8x1xf32>
      %c0_28 = arith.constant 0 : index
      %c0_29 = arith.constant 0 : index
      %43 = vector.load %arg7[%c0_28, %c0_29] : memref<8x1xf32, #tpu.memory_space<vmem>>, vector<8x1xf32>
      tpu.vector_store %arg7[%c0_28, %c0_29], %42 {strides = array<i32>} : memref<8x1xf32, #tpu.memory_space<vmem>>, vector<8x1xf32>,
    } else {
    }
    %c0 = arith.constant 0 : index
    %c0_1 = arith.constant 0 : index
    %3 = vector.load %arg2[%c0, %c0_1] : memref<8x32xf32, #tpu.memory_space<vmem>>, vector<8x32xf32>
    %4 = tpu.iota {dimensions = array<i32: 1>} : vector<1x32xi32>
    %c0_2 = arith.constant 0 : index
    %c0_3 = arith.constant 0 : index
    %5 = vector.load %arg3[%c0_2, %c0_3] : memref<8x1xi32, #tpu.memory_space<vmem>>, vector<8x1xi32>
    %c32_i32 = arith.constant 32 : i32
    %6 = arith.muli %arg1, %c32_i32 : i32
    %7 = vector.broadcast %6 : i32 to vector<8x1xi32>
    %8 = arith.subi %5, %7 : vector<8x1xi32>
    %c0_4 = arith.constant 0 : index
    %c0_5 = arith.constant 0 : index
    %9 = vector.load %arg5[%c0_4, %c0_5] : memref<8x1xf32, #tpu.memory_space<vmem>>, vector<8x1xf32>
    %cst = arith.constant dense<0xFF800000> : vector<8xf32>
    %10 = vector.multi_reduction <maximumf>, %3, %cst [1] : vector<8x32xf32> to vector<8xf32>
    %11 = vector.shape_cast %10 : vector<8xf32> to vector<8x1xf32>
    %12 = arith.maximumf %9, %11 : vector<8x1xf32>
    %13 = arith.subf %9, %12 : vector<8x1xf32>
    %14 = math.exp %13 : vector<8x1xf32>
    %c0_6 = arith.constant 0 : index
    %c0_7 = arith.constant 0 : index
    %15 = vector.load %arg6[%c0_6, %c0_7] : memref<8x1xf32, #tpu.memory_space<vmem>>, vector<8x1xf32>
    %16 = arith.mulf %14, %15 : vector<8x1xf32>
    %17 = vector.broadcast %12 : vector<8x1xf32> to vector<8x32xf32>
    %18 = arith.subf %3, %17 : vector<8x32xf32>
    %19 = math.exp %18 : vector<8x32xf32>
    %cst_8 = arith.constant dense<0.000000e+00> : vector<8xf32>
    %20 = vector.multi_reduction <add>, %19, %cst_8 [1] : vector<8x32xf32> to vector<8xf32>
    %21 = vector.shape_cast %20 : vector<8xf32> to vector<8x1xf32>
    %22 = arith.addf %16, %21 : vector<8x1xf32>
    %c0_9 = arith.constant 0 : index
    %c0_10 = arith.constant 0 : index
    %23 = vector.load %arg6[%c0_9, %c0_10] : memref<8x1xf32, #tpu.memory_space<vmem>>, vector<8x1xf32>
    tpu.vector_store %arg6[%c0_9, %c0_10], %22 {strides = array<i32>} : memref<8x1xf32, #tpu.memory_space<vmem>>, vector<8x1xf32>,
    %c0_11 = arith.constant 0 : index
    %c0_12 = arith.constant 0 : index
    %24 = vector.load %arg5[%c0_11, %c0_12] : memref<8x1xf32, #tpu.memory_space<vmem>>, vector<8x1xf32>
    tpu.vector_store %arg5[%c0_11, %c0_12], %12 {strides = array<i32>} : memref<8x1xf32, #tpu.memory_space<vmem>>, vector<8x1xf32>,
    %c0_13 = arith.constant 0 : index
    %c0_14 = arith.constant 0 : index
    %25 = vector.load %arg7[%c0_13, %c0_14] : memref<8x1xf32, #tpu.memory_space<vmem>>, vector<8x1xf32>
    %26 = vector.broadcast %4 : vector<1x32xi32> to vector<8x32xi32>
    %27 = vector.broadcast %8 : vector<8x1xi32> to vector<8x32xi32>
    %28 = arith.cmpi eq, %26, %27 : vector<8x32xi32>
    %cst_15 = arith.constant 0.000000e+00 : f32
    %29 = vector.broadcast %cst_15 : f32 to vector<8x32xf32>
    %30 = arith.select %28, %3, %29 : vector<8x32xi1>, vector<8x32xf32>
    %cst_16 = arith.constant dense<0.000000e+00> : vector<8xf32>
    %31 = vector.multi_reduction <add>, %30, %cst_16 [1] : vector<8x32xf32> to vector<8xf32>
    %32 = vector.shape_cast %31 : vector<8xf32> to vector<8x1xf32>
    %33 = arith.addf %25, %32 : vector<8x1xf32>
    %c0_17 = arith.constant 0 : index
    %c0_18 = arith.constant 0 : index
    %34 = vector.load %arg7[%c0_17, %c0_18] : memref<8x1xf32, #tpu.memory_space<vmem>>, vector<8x1xf32>
    tpu.vector_store %arg7[%c0_17, %c0_18], %33 {strides = array<i32>} : memref<8x1xf32, #tpu.memory_space<vmem>>, vector<8x1xf32>,
    %c0_i32_19 = arith.constant 0 : i32
    %35 = arith.cmpi eq, %arg1, %c0_i32_19 : i32
    %36 = arith.extui %35 : i1 to i32
    %c0_i32_20 = arith.constant 0 : i32
    %37 = arith.cmpi ne, %36, %c0_i32_20 : i32
    scf.if %37 {
      %c0_21 = arith.constant 0 : index
      %c0_22 = arith.constant 0 : index
      %38 = vector.load %arg5[%c0_21, %c0_22] : memref<8x1xf32, #tpu.memory_space<vmem>>, vector<8x1xf32>
      %c0_23 = arith.constant 0 : index
      %c0_24 = arith.constant 0 : index
      %39 = vector.load %arg6[%c0_23, %c0_24] : memref<8x1xf32, #tpu.memory_space<vmem>>, vector<8x1xf32>
      %40 = math.log %39 : vector<8x1xf32>
      %41 = arith.addf %38, %40 : vector<8x1xf32>
      %c0_25 = arith.constant 0 : index
      %c0_26 = arith.constant 0 : index
      %42 = vector.load %arg7[%c0_25, %c0_26] : memref<8x1xf32, #tpu.memory_space<vmem>>, vector<8x1xf32>
      %43 = arith.subf %41, %42 : vector<8x1xf32>
      %c0_27 = arith.constant 0 : index
      %c0_28 = arith.constant 0 : index
      %44 = vector.load %arg4[%c0_27, %c0_28] : memref<8x1xf32, #tpu.memory_space<vmem>>, vector<8x1xf32>
      tpu.vector_store %arg4[%c0_27, %c0_28], %43 {strides = array<i32>} : memref<8x1xf32, #tpu.memory_space<vmem>>, vector<8x1xf32>,
    } else {
    }
    return
  }
  func.func @transform_0(%arg0: i32, %arg1: i32) -> (i32, i32) {
    %c0_i32 = arith.constant 0 : i32
    return %arg0, %arg1 : i32, i32
  }
  func.func @transform_1(%arg0: i32, %arg1: i32) -> (i32, i32) {
    %c0_i32 = arith.constant 0 : i32
    %c0_i32_0 = arith.constant 0 : i32
    return %arg0, %c0_i32 : i32, i32
  }
  func.func @transform_2(%arg0: i32, %arg1: i32) -> (i32, i32) {
    %c0_i32 = arith.constant 0 : i32
    %c0_i32_0 = arith.constant 0 : i32
    return %arg0, %c0_i32 : i32, i32
  }
}

</mosaic_0001>

<bundles_post_ra>
// kernel: tpu_custom_call.1
= control target key start
LH: loop header
LB: loop body
LE: loop exit
PB: predicated region body
PF: predicated region fallthrough
CT: control target
= control target key end

     0   :  { %vm27_vm0 = vcmask 261120   ;;  %vm15_vm1 = vcmask 7168   ;;  %v89_v1 = vmov -inf   ;;  %v90_v3 = vmov 0   ;;  %s126_s0 = inlined_call_operand.vmem [shape: f32[8,32], index: 0, kind: input, shape index: {}]   ;;  %s127_s1 = inlined_call_operand.vmem [shape: s32[8,1], index: 1, kind: input, shape index: {}]   ;;  %s128_s2 = inlined_call_operand.vmem [shape: f32[8,1], index: 2, kind: output, shape index: {}]  }
   0x1   :  { %v19_v0 = vld [vmem:[%s126_s0] sm:$0xff]  ;;  %16 = vst.msk [vmem:[#allocation2] sm:$0xff] %vm15_vm1, %v89_v1  ;;  %81 = vset.pattern.permute.xlu0 %v90_v3  ;;  %82 = vset.pattern.permute.xlu1 %v90_v3  ;;  %v91_v4 = vmov 0.0   ;;  %v20_v10 = vlaneseq }
   0x2   :  { %v28_v2 = vsel %vm27_vm0, %v19_v0, -inf  ;;  %17 = vst.msk [vmem:[#allocation3] sm:$0xff] %vm15_vm1, %v91_v4  ;;  %v22_v5 = vld [vmem:[%s127_s1] sm:$0xff] }
   0x3   :  { %29 = vmax.xlane.f32.xlu0 %v28_v2  ;;  %18 = vst.msk [vmem:[#allocation4] sm:$0xff] %vm15_vm1, %v91_v4  ;;  %54 = vperm.xlu1 %82, %v22_v5   ;;  %v21_v12 = vand.u32 127, %v20_v10 }
   0x8   :  { %v26_v6 = vld [vmem:[#allocation2] sm:$0xff] }
   0x9   :  { %v35_v25 = vld [vmem:[#allocation3] sm:$0xff] }
   0xa   :  { %v52_v20 = vld [vmem:[#allocation4] sm:$0xff] }
  0x75   :  { %v55_v11 = vpop.permute.xlu1 %54 }
  0x76   :  { %v30_v7 = vpop.xlane.xlu0 %29  ;;  %vm56_vm2 = vcmp.eq.s32.totalorder %v21_v12, %v55_v11 }
  0x77   :  { %v31_v8 = vmax.f32 %v26_v6, %v30_v7  ;;  %v57_v13 = vsel %vm56_vm2, %v19_v0, 0.0 }
  0x78   :  { %v58_v14 = vsel %vm27_vm0, %v57_v13, 0.0 }
  0x79   :  { %v32_v9 = vsub.f32 %v26_v6, %v31_v8  ;;  %51 = vst.msk [vmem:[#allocation2] sm:$0xff] %vm15_vm1, %v31_v8  ;;  %39 = vperm.xlu0 %81, %v31_v8   ;;  %59 = vadd.xlane.f32.xlu2 %v58_v14 }
  0x7b   :  { %v33_v23 = vmul.f32 1.442695, %v32_v9 }
  0x80   :  { %v66_v32 = vld [vmem:[#allocation2] sm:$0xff] }
  0xeb   :  { %v40_v15 = vpop.permute.xlu0 %39 }
  0xec   :  { %v42_v16 = vsub.f32 %v19_v0, %v40_v15  ;;  %v60_v21 = vpop.xlane.xlu2 %59 }
  0xed   :  { %v61_v22 = vadd.f32 %v60_v21, %v52_v20 }
  0xee   :  { %v43_v17 = vmul.f32 1.442695, %v42_v16 }
  0xef   :  { %62 = vst.msk [vmem:[#allocation4] sm:$0xff] %vm15_vm1, %v61_v22 }
  0xf0   :  { %83 = vpow2.f32 %v43_v17 }
  0xf1   :  { %85 = vpow2.f32 %v33_v23 }
  0xf6   :  { %v84_v18 = vpop.eup %83  ;;  %v71_v33 = vld [vmem:[#allocation4] sm:$0xff] }
  0xf7   :  { %v45_v19 = vsel %vm27_vm0, %v84_v18, 0.0  ;;  %v86_v24 = vpop.eup %85 }
  0xf8   :  { %46 = vadd.xlane.f32.xlu1 %v45_v19  ;;  %v36_v26 = vmul.f32 %v86_v24, %v35_v25 }
 0x16b   :  { %v47_v27 = vpop.xlane.xlu1 %46 }
 0x16c   :  { %v48_v28 = vadd.f32 %v47_v27, %v36_v26 }
 0x16e   :  { %50 = vst.msk [vmem:[#allocation3] sm:$0xff] %vm15_vm1, %v48_v28 }
 0x175   :  { %v67_v29 = vld [vmem:[#allocation3] sm:$0xff] }
 0x176   :  { %87 = vlog2.f32 %v67_v29 }
 0x17c   :  { %v88_v30 = vpop.eup %87 }
 0x17d   :  { %v69_v31 = vmul.f32 0.6931472, %v88_v30 }
 0x17f   :  { %v70_v34 = vadd.f32 %v69_v31, %v66_v32 }
 0x181   :  { %v72_v35 = vsub.f32 %v70_v34, %v71_v33 }
 0x183   :  { %73 = vst.msk [vmem:[%s128_s2] sm:$0xff] %vm15_vm1, %v72_v35 }

</bundles_post_ra>
